<compile_context>
chip_gen: v6e
topology: v6e:2x2x1
jax: 0.10.0
libtpu: 0.0.40
codegen_flags: <defaults>
</compile_context>

<pallas_src>
import functools

import jax
import jax.numpy as jnp
from jax import lax
from jax.experimental import pallas as pl
from jax.experimental.pallas import tpu as pltpu


def _round_up(x, m):
    return ((x + m - 1) // m) * m


def _vmem_capacity_bytes():
    """Generation-aware VMEM capacity; conservative (v7x) fallback if query fails."""
    try:
        return int(pltpu.get_tpu_info().vmem_capacity_bytes)
    except Exception:
        return 64 * 1024 * 1024


def _pick_hw_tile(hw, c, itemsize, vmem_cap, input_frac=0.4):
    """Largest 128-multiple tile s.t. 2 inputs x 2 buffers fit in ~input_frac of VMEM."""
    hw_pad = _round_up(hw, 128)
    bytes_per_128_lanes = 2 * 2 * _round_up(c, 8) * 128 * itemsize
    units = max(1, int(vmem_cap * input_frac) // bytes_per_128_lanes)
    return min(hw_pad, units * 128)


def _style_loss_kernel(xf_ref, yf_ref, m_ref, m_acc, *,
                       hw, hw_tile, k_per_split, needs_mask, matmul_dtype, precision):
    s_idx = pl.program_id(1)          # hw-split index
    k = pl.program_id(2)              # contraction tile within this split

    # Reset the accumulator at the start of each (batch, split) contraction sweep.
    @pl.when(k == 0)
    def _():
        m_acc[...] = jnp.zeros_like(m_acc)

    xf = xf_ref[0]                    # (c, hw_tile)
    yf = yf_ref[0]

    if needs_mask:
        # Zero lanes past the true hw extent (also covers clamped out-of-range tiles);
        # zeros contribute nothing to the Gram accumulation.
        kt = s_idx * k_per_split + k  # UNclamped global tile index
        lane = lax.broadcasted_iota(jnp.int32, xf.shape, dimension=1)
        valid = (kt * hw_tile + lane) < hw
        zero = jnp.zeros((), xf.dtype)
        xf = jnp.where(valid, xf, zero)
        yf = jnp.where(valid, yf, zero)

    s = xf + yf
    d = xf - yf
    if matmul_dtype is not None:      # optional compute-bound bf16 fast path
        s = s.astype(matmul_dtype)
        d = d.astype(matmul_dtype)

    # Single factorized Gram-difference partial on the MXU: contract over the hw
    # (lane) axis directly, i.e. s @ d^T without materializing a transpose.
    dn = (((1,), (1,)), ((), ()))
    m_acc[...] += lax.dot_general(s, d, dimension_numbers=dn,
                                  preferred_element_type=jnp.float32,
                                  precision=precision)

    # Emit this (batch, split)'s partial M; symmetrization + scaling happen in JAX.
    @pl.when(k == pl.num_programs(2) - 1)
    def _():
        m_ref[0, 0] = m_acc[...]


def style_loss(x, y, *, hw_tile=None, n_splits=1, matmul_dtype=None,
               precision=lax.Precision.HIGHEST):
    """x, y: (b, c, h, w). Returns scalar MSE between per-batch Gram matrices."""
    assert x.shape == y.shape and x.dtype == y.dtype
    b, c, h, w = x.shape
    hw = h * w
    itemsize = jnp.dtype(x.dtype).itemsize

    xf = x.reshape(b, c, hw)
    yf = y.reshape(b, c, hw)

    vmem_cap = _vmem_capacity_bytes()
    if hw_tile is None:
        hw_tile = _pick_hw_tile(hw, c, itemsize, vmem_cap)
    hw_tile = max(128, _round_up(int(hw_tile), 128))
    hw_tile = min(hw_tile, _round_up(hw, 128))

    nk_total = pl.cdiv(hw, hw_tile)                 # contraction tiles per batch
    n_splits = max(1, min(int(n_splits), nk_total)) # parallel hw splits (v7x: 2)
    kps = pl.cdiv(nk_total, n_splits)               # tiles per split
    needs_mask = (hw % hw_tile != 0) or (nk_total % n_splits != 0)

    def in_map(i, s, k):
        # Clamp so padded split iterations stay in-bounds; the kernel masks them out.
        kt = jnp.minimum(s * kps + k, nk_total - 1)
        return (i, 0, kt)

    kernel = functools.partial(
        _style_loss_kernel,
        hw=hw, hw_tile=hw_tile, k_per_split=kps, needs_mask=needs_mask,
        matmul_dtype=matmul_dtype, precision=precision)

    # VMEM accounting (double-buffered inputs + double-buffered output + scratch).
    in_bytes = 2 * 2 * _round_up(c, 8) * hw_tile * itemsize
    out_bytes = 2 * _round_up(c, 8) * _round_up(c, 128) * 4
    scratch_bytes = _round_up(c, 8) * _round_up(c, 128) * 4
    vmem_limit = max(in_bytes + out_bytes + scratch_bytes + (4 << 20), 32 << 20)

    cost = pl.CostEstimate(
        flops=2 * b * c * c * hw,
        transcendentals=0,
        bytes_accessed=2 * b * c * hw * itemsize + b * n_splits * c * c * 4)

    partials = pl.pallas_call(
        kernel,
        out_shape=jax.ShapeDtypeStruct((b, n_splits, c, c), jnp.float32),
        grid_spec=pltpu.PrefetchScalarGridSpec(
            num_scalar_prefetch=0,
            grid=(b, n_splits, kps),
            in_specs=[
                pl.BlockSpec((1, c, hw_tile), in_map),
                pl.BlockSpec((1, c, hw_tile), in_map),
            ],
            out_specs=pl.BlockSpec((1, 1, c, c), lambda i, s, k: (i, s, 0, 0)),
            scratch_shapes=[pltpu.VMEM((c, c), jnp.float32)],  # single M accumulator
        ),
        compiler_params=pltpu.CompilerParams(
            dimension_semantics=("parallel", "parallel", "arbitrary"),
            vmem_limit_bytes=int(vmem_limit),
        ),
        cost_estimate=cost,
    )(xf, yf)

    # Tiny epilogue in plain JAX: combine hw splits, symmetrize, scale, mean.
    m = jnp.sum(partials, axis=1)                                   # (b, c, c)
    diff = (0.5 / float(b * c * h * w)) * (m + jnp.swapaxes(m, 1, 2))  # Gx - Gy
    return jnp.sum(diff * diff) / float(b * c * c)                  # F.mse_loss


def _style_loss_ref(x, y):
    b, c, h, w = x.shape
    xf = x.reshape(b, c, h * w).astype(jnp.float32)
    yf = y.reshape(b, c, h * w).astype(jnp.float32)
    hi = lax.Precision.HIGHEST
    gx = jnp.einsum("bij,bkj->bik", xf, xf, precision=hi) / (b * c * h * w)
    gy = jnp.einsum("bij,bkj->bik", yf, yf, precision=hi) / (b * c * h * w)
    return jnp.mean((gx - gy) ** 2)


if __name__ == "__main__":
    key = jax.random.PRNGKey(0)
    kx, ky, kx2, ky2 = jax.random.split(key, 4)

    # Case 1: small NCHW input, auto-sized hw tile (hw = 256 -> single tile).
    b, c, h, w = 2, 4, 16, 16
    x = jax.random.normal(kx, (b, c, h, w), dtype=jnp.float32)
    y = jax.random.normal(ky, (b, c, h, w), dtype=jnp.float32)
    loss = style_loss(x, y)
    jax.block_until_ready(loss)
    ref = _style_loss_ref(x, y)
    assert jnp.allclose(loss, ref, rtol=1e-4, atol=1e-6), (loss, ref)

    # Case 2: ragged hw (12*12 = 144), explicit 128-lane tile, 2-way hw split.
    # Exercises last-tile lane masking and the per-split partial-M reduction.
    x2 = jax.random.normal(kx2, (2, 4, 12, 12), dtype=jnp.float32)
    y2 = jax.random.normal(ky2, (2, 4, 12, 12), dtype=jnp.float32)
    loss2 = style_loss(x2, y2, hw_tile=128, n_splits=2)
    jax.block_until_ready(loss2)
    ref2 = _style_loss_ref(x2, y2)
    assert jnp.allclose(loss2, ref2, rtol=1e-4, atol=1e-6), (loss2, ref2)

    print("KERNEL_OK")
</pallas_src>

<mosaic_0001>
module attributes {stable_mosaic.version = 11 : i64} {
  func.func @_style_loss_kernel(%arg0: i32, %arg1: i32, %arg2: i32, %arg3: memref<1x4x256xf32, #tpu.memory_space<vmem>>, %arg4: memref<1x4x256xf32, #tpu.memory_space<vmem>>, %arg5: memref<1x1x4x4xf32, #tpu.memory_space<vmem>>, %arg6: memref<4x4xf32, #tpu.memory_space<vmem>>) attributes {dimension_semantics = [#tpu.dimension_semantics<parallel>, #tpu.dimension_semantics<parallel>, #tpu.dimension_semantics<arbitrary>], iteration_bounds = array<i64: 2, 1, 1>, scalar_prefetch = 0 : i64, scratch_operands = 1 : i64, tpu.core_type = #tpu.core_type<tc>, window_params = [{transform_indices = @transform_0, window_bounds = array<i64: 1, 4, 256>}, {transform_indices = @transform_1, window_bounds = array<i64: 1, 4, 256>}, {transform_indices = @transform_2, window_bounds = array<i64: 1, 1, 4, 4>}]} {
    %c0_i32 = arith.constant 0 : i32
    %0 = arith.cmpi eq, %arg2, %c0_i32 : i32
    %1 = arith.extui %0 : i1 to i32
    %c0_i32_0 = arith.constant 0 : i32
    %2 = arith.cmpi ne, %1, %c0_i32_0 : i32
    scf.if %2 {
      %cst_12 = arith.constant 0.000000e+00 : f32
      %16 = vector.broadcast %cst_12 : f32 to vector<4x4xf32>
      %c0_13 = arith.constant 0 : index
      %c0_14 = arith.constant 0 : index
      %17 = vector.load %arg6[%c0_13, %c0_14] : memref<4x4xf32, #tpu.memory_space<vmem>>, vector<4x4xf32>
      tpu.vector_store %arg6[%c0_13, %c0_14], %16 {strides = array<i32>} : memref<4x4xf32, #tpu.memory_space<vmem>>, vector<4x4xf32>,
    } else {
    }
    %c0 = arith.constant 0 : index
    %c0_1 = arith.constant 0 : index
    %c0_2 = arith.constant 0 : index
    %3 = vector.load %arg3[%c0, %c0_1, %c0_2] : memref<1x4x256xf32, #tpu.memory_space<vmem>>, vector<1x4x256xf32>
    %4 = vector.shape_cast %3 : vector<1x4x256xf32> to vector<4x256xf32>
    %c0_3 = arith.constant 0 : index
    %c0_4 = arith.constant 0 : index
    %c0_5 = arith.constant 0 : index
    %5 = vector.load %arg4[%c0_3, %c0_4, %c0_5] : memref<1x4x256xf32, #tpu.memory_space<vmem>>, vector<1x4x256xf32>
    %6 = vector.shape_cast %5 : vector<1x4x256xf32> to vector<4x256xf32>
    %7 = arith.addf %4, %6 : vector<4x256xf32>
    %8 = arith.subf %4, %6 : vector<4x256xf32>
    %c0_6 = arith.constant 0 : index
    %c0_7 = arith.constant 0 : index
    %9 = vector.load %arg6[%c0_6, %c0_7] : memref<4x4xf32, #tpu.memory_space<vmem>>, vector<4x4xf32>
    %cst = arith.constant dense<0.000000e+00> : vector<4x4xf32>
    %10 = tpu.matmul %7, %8, %cst {dimension_numbers = #tpu.dot_dimension_numbers<[1], [1], [0], [0], [0, 0, 1, 0], [], []>, precision = #tpu.contract_precision<fp32>} : vector<4x256xf32>, vector<4x256xf32>, vector<4x4xf32> -> vector<4x4xf32>
    %11 = arith.addf %9, %10 : vector<4x4xf32>
    %c0_8 = arith.constant 0 : index
    %c0_9 = arith.constant 0 : index
    %12 = vector.load %arg6[%c0_8, %c0_9] : memref<4x4xf32, #tpu.memory_space<vmem>>, vector<4x4xf32>
    tpu.vector_store %arg6[%c0_8, %c0_9], %11 {strides = array<i32>} : memref<4x4xf32, #tpu.memory_space<vmem>>, vector<4x4xf32>,
    %c0_i32_10 = arith.constant 0 : i32
    %13 = arith.cmpi eq, %arg2, %c0_i32_10 : i32
    %14 = arith.extui %13 : i1 to i32
    %c0_i32_11 = arith.constant 0 : i32
    %15 = arith.cmpi ne, %14, %c0_i32_11 : i32
    scf.if %15 {
      %c0_12 = arith.constant 0 : index
      %c0_13 = arith.constant 0 : index
      %16 = vector.load %arg6[%c0_12, %c0_13] : memref<4x4xf32, #tpu.memory_space<vmem>>, vector<4x4xf32>
      %c0_14 = arith.constant 0 : index
      %c0_15 = arith.constant 0 : index
      %c0_16 = arith.constant 0 : index
      %c0_17 = arith.constant 0 : index
      %17 = vector.load %arg5[%c0_14, %c0_15, %c0_16, %c0_17] : memref<1x1x4x4xf32, #tpu.memory_space<vmem>>, vector<1x1x4x4xf32>
      %18 = vector.shape_cast %17 : vector<1x1x4x4xf32> to vector<4x4xf32>
      %19 = vector.shape_cast %16 : vector<4x4xf32> to vector<1x1x4x4xf32>
      tpu.vector_store %arg5[%c0_14, %c0_15, %c0_16, %c0_17], %19 {strides = array<i32>} : memref<1x1x4x4xf32, #tpu.memory_space<vmem>>, vector<1x1x4x4xf32>,
    } else {
    }
    return
  }
  func.func @transform_0(%arg0: i32, %arg1: i32, %arg2: i32) -> (i32, i32, i32) {
    %c1_i32 = arith.constant 1 : i32
    %0 = arith.muli %arg1, %c1_i32 : i32
    %1 = arith.addi %0, %arg2 : i32
    %c0_i32 = arith.constant 0 : i32
    %2 = arith.minsi %1, %c0_i32 : i32
    %c0_i32_0 = arith.constant 0 : i32
    %c0_i32_1 = arith.constant 0 : i32
    return %arg0, %c0_i32_0, %2 : i32, i32, i32
  }
  func.func @transform_1(%arg0: i32, %arg1: i32, %arg2: i32) -> (i32, i32, i32) {
    %c1_i32 = arith.constant 1 : i32
    %0 = arith.muli %arg1, %c1_i32 : i32
    %1 = arith.addi %0, %arg2 : i32
    %c0_i32 = arith.constant 0 : i32
    %2 = arith.minsi %1, %c0_i32 : i32
    %c0_i32_0 = arith.constant 0 : i32
    %c0_i32_1 = arith.constant 0 : i32
    return %arg0, %c0_i32_0, %2 : i32, i32, i32
  }
  func.func @transform_2(%arg0: i32, %arg1: i32, %arg2: i32) -> (i32, i32, i32, i32) {
    %c0_i32 = arith.constant 0 : i32
    %c0_i32_0 = arith.constant 0 : i32
    %c0_i32_1 = arith.constant 0 : i32
    return %arg0, %arg1, %c0_i32, %c0_i32_0 : i32, i32, i32, i32
  }
}

</mosaic_0001>

<bundles_post_ra>
// kernel: tpu_custom_call.1
= control target key start
LH: loop header
LB: loop body
LE: loop exit
PB: predicated region body
PF: predicated region fallthrough
CT: control target
= control target key end

     0   :  { %7 = vsyncpa [#allocation4], 0  ;;  %s1296_s0 = inlined_call_operand.hbm [shape: f32[2,4,256], index: 0, kind: input, shape index: {}]   ;;  %s1297_s1 = inlined_call_operand.hbm [shape: f32[2,4,256], index: 1, kind: input, shape index: {}]   ;;  %s1298_s2 = inlined_call_operand.hbm [shape: f32[2,1,4,4], index: 2, kind: output, shape index: {}]  }
   0x1   :  { %9 = vsyncpa [#allocation4 + $0x1], 0 }
   0x2   :  { %10 = vsyncpa [#allocation7], 0 }
   0x3   :  { %12 = vsyncpa [#allocation7 + $0x1], 0 }
   0x4   :  { %13 = vsyncpa [#allocation5], 0 }
   0x5   :  { %15 = vsyncpa [#allocation5 + $0x1], 0  ;;  %s1125_s9 = smov 0   ;;  %s1127_s10 = smov 0  }
   0x6   :  { %s1129_s11 = smov 0   ;;  %s1131_s12 = smov 0  }
   0x7   :  { %s1133_s13 = smov 0   ;;  %s1135_s14 = smov 0  }
   0x8 LB: > { %s876_s15 = sadd.s32 4294967295, %s1104_s14   ;;  %s877_s16 = sadd.s32 4294967294, %s1104_s14   ;;  %s1104_s14 = sphi %s1135_s14, %s21_s14   ;;  %s1100_s13 = sphi %s1133_s13, %s1310_s13   ;;  %s1096_s12 = sphi %s1131_s12, %s1309_s12   ;;  %s1092_s11 = sphi %s1129_s11, %s1308_s11   ;;  %s1088_s10 = sphi %s1127_s10, %s1307_s10   ;;  %s1084_s9 = sphi %s1125_s9, %s1306_s9  }
   0x9   : > { %s40_s17 = sadd.s32 1, %s1100_s13  ;;  %s55_s18 = sadd.s32 1, %s1092_s11 }
   0xa   : > { %p42_p0 = scmp.ge.s32.totalorder %s40_s17, 2  ;;  %p62_p1 = scmp.ne.s32.totalorder %s1092_s11, %s1088_s10 }
   0xb   : > { %p63_p2 = scmp.eq.s32.totalorder %s1104_s14, 0  ;;  %p68_p3 = scmp.ne.s32.totalorder %s1088_s10, %s1084_s9 }
   0xc   : > { %s1312_s17 = smov (%p42_p0, %s40_s17), 0  ;;  %p69_p5 = scmp.eq.s32.totalorder %s876_s15, 0 }
   0xd   : > { %p1166_p4 = por %p63_p2, %p62_p1  ;;  %s50_s20 = ssub.s32 %s1100_s13, %s1312_s17 }
   0xe   : > { %p128_p6 = scmp.eq.s32.totalorder %s876_s15, 1  ;;  %p53_p7 = scmp.eq.s32.totalorder %s50_s20, 0 }
   0xf   : > { %p1172_p8 = por %p69_p5, %p68_p3  ;;  %p134_p10 = scmp.eq.s32.totalorder %s877_s16, 1 }
  0x10   : > { %p1176_p9 = por %p128_p6, %p62_p1  ;;  %p913_p13 = scmp.lt.s32.totalorder %s1104_s14, 2 }
  0x11   : > { %s1181_s23 = scalar_select %p53_p7, %s1092_s11, %s55_s18  }
  0x12   : > { %p1183_p11 = por %p134_p10, %p68_p3  ;;  %s1190_s25 = sand.u32 1, %s1092_s11  }
  0x13   : > { %s880_s26 = sshll.u32 %s1190_s25, 3  ;;  %s894_s27 = sshll.u32 %s1100_s13, 7 }
  0x14   : > { %s169_s30 = scalar_lea.hbm %s1296_s0, %s894_s27  ;;  %s158_s3 = scalar_lea.vmem [#allocation3], %s880_s26 }
  0x15   : > { %s171_s4 = sshll.u32 %s158_s3, 4  ;;  %p1199_p0 = pnand %p913_p13, %p1166_p4  ;;  %s172_s4 = int_to_ptr.vmem [resolvable:$true] %s171_s4 }
  0x16   : > { %p886_p1 = scmp.ge.s32.totalorder %s1104_s14, 1  ;;  %p200_p2 = scmp.lt.s32.totalorder %s1104_s14, 3 }
  0x17   : > { %s155_s6 = scalar_lea.sflag [#allocation4], %s1190_s25  ;;  %p966_p3 = pneg %p1199_p0 }
  0x18   : > { %s977_s7 = scalar_lea.vmem %s172_s4, 128  ;;  %s1106_s8 = smov [#allocation3]  }
  0x19   : > { %p978_p5 = scmp.ne.s32.totalorder %s172_s4, %s977_s7  ;;  %s982_s15 = sshll.u32 %s1106_s8, 4  ;;  %s983_s15 = int_to_ptr.vmem [resolvable:$false] %s982_s15 }
  0x1a   : > { %s984_s16 = scalar_lea.vmem %s983_s15, 256  ;;  %p985_p4 = scmp.lt.s32.totalorder %s172_s4, %s983_s15 }
  0x1b   : > { %p980_p6 = pnand %p978_p5, %p966_p3  ;;  %p986_p10 = scmp.lt.s32.totalorder %s984_s16, %s977_s7 }
  0x1d   : > { %p981_p7 = pneg %p980_p6  ;;  %p987_p13 = por %p986_p10, %p985_p4 }
  0x1f   : > { %p988_p12 = pnand %p987_p13, %p981_p7 }
  0x21   : > { %991 = shalt.err (!%p988_p12)
}
  0x22   : > { %905 = dma.hbm_to_vmem [thread:$0]  (!%p1199_p0), %s169_s30, 128, %s172_s4, %s155_s6  }
  0x23   : > { %p1217_p5 = pnand %p886_p1, %p200_p2  ;;  %s193_s28 = scalar_lea.hbm %s1297_s1, %s894_s27 }
  0x24   : > { %s182_s29 = scalar_lea.vmem [#allocation6], %s880_s26  ;;  %s179_s7 = scalar_lea.sflag [#allocation7], %s1190_s25 }
  0x25   : > { %s195_s3 = sshll.u32 %s182_s29, 4  ;;  %s1107_s30 = smov [#allocation6]   ;;  %s196_s3 = int_to_ptr.vmem [resolvable:$true] %s195_s3 }
  0x26   : > { %s1005_s8 = scalar_lea.vmem %s196_s3, 128  ;;  %s1010_s4 = sshll.u32 %s1107_s30, 4  ;;  %s1011_s4 = int_to_ptr.vmem [resolvable:$false] %s1010_s4 }
  0x27   : > { %p1006_p12 = scmp.ne.s32.totalorder %s196_s3, %s1005_s8  ;;  %s1012_s6 = scalar_lea.vmem %s1011_s4, 256 }
  0x28   : > { %p1013_p1 = scmp.lt.s32.totalorder %s196_s3, %s1011_s4  ;;  %p1014_p2 = scmp.lt.s32.totalorder %s1012_s6, %s1005_s8 }
  0x29   : > { %p1008_p6 = pnand %p1006_p12, %p966_p3 }
  0x2a   : > { %p1015_p4 = por %p1014_p2, %p1013_p1 }
  0x2b   : > { %p1009_p7 = pneg %p1008_p6 }
  0x2d   : > { %p1016_p10 = pnand %p1015_p4, %p1009_p7 }
  0x2f   : > { %1019 = shalt.err (!%p1016_p10)
}
  0x30   : > { %908 = dma.hbm_to_vmem [thread:$0]  (!%p1199_p0), %s193_s28, 128, %s196_s3, %s179_s7  }
  0x31   : > { %204 = sbr.rel (%p1217_p5) target bundleno = 302 (0x12e), region = 28  ;;  %s1233_s25 = sand.u32 (!%p1217_p5), 1, %s1088_s10  }
  0x32   : > { %s887_s26 = sshll.u32 (!%p1217_p5), %s1233_s25, 3  ;;  %s207_s27 = scalar_lea.sflag (!%p1217_p5), [#allocation4], %s1233_s25 }
  0x33   : > { %s210_s15 = scalar_lea.vmem (!%p1217_p5), [#allocation3], %s887_s26 }
  0x36   : > { %1071 = dma.done.wait (%p1172_p8), %s207_s27, 128  }
  0x37   : > { %1073 = vsyncadd (%p1172_p8), %s207_s27, 4294967168  ;;  %s216_s5 = scalar_lea.sflag [#allocation7], %s1233_s25  ;;  %s219_s16 = scalar_lea.vmem [#allocation6], %s887_s26 }
  0x38   : > { %1075 = dma.done.wait (%p1172_p8), %s216_s5, 128  }
  0x39   : > { %1077 = vsyncadd (%p1172_p8), %s216_s5, 4294967168  ;;  %v259_v0 = vld [vmem:[%s210_s15] sm:$0xff]  ;;  %v260_v1 = vld [vmem:[%s219_s16] sm:$0xff]  ;;  %vm257_vm0 = vcmask 27648   ;;  %v1108_v26 = vmov 0.0   ;;  %s889_s21 = sshll.u32 %s1233_s25, 2 }
  0x3a   : > { %v262_v2 = vsub.f32 %v259_v0, %v260_v1  ;;  %v261_v3 = vadd.f32 %v260_v1, %v259_v0  ;;  %258 = vst.msk [vmem:[#allocation2] sm:$0xf] %vm257_vm0, %v1108_v26  ;;  %s891_s18 = sshll.u32 %s1096_s12, 6  ;;  %s244_s19 = scalar_lea.vmem [#allocation8], %s889_s21 }
  0x3b   : > { %s765_s20 = sshll.u32 %s244_s19, 4  ;;  %s1253_s3 = scalar_lea.hbm %s1298_s2, %s891_s18  ;;  %s766_s20 = int_to_ptr.vmem [resolvable:$true] %s765_s20 }
  0x3c   : > { %v268_v4 = vcombine.high %v262_v2, %v262_v2  ;;  %v302_v5 = vand.u32 4294901760, %v262_v2  ;;  %v265_v6 = vcombine.high %v261_v3, %v261_v3  ;;  %v342_v7 = vand.u32 4294901760, %v261_v3  ;;  %s751_s7 = scalar_lea.sflag [#allocation5], %s1233_s25  ;;  %s1020_s8 = scalar_lea.vmem %s766_s20, 64 }
  0x3d   : > { %p1021_p8 = scmp.ne.s32.totalorder %s766_s20, %s1020_s8  ;;  %s1109_s30 = smov [#allocation8]  }
  0x3e   : > { %v300_v8 = vand.u32 4294901760, %v268_v4  ;;  %v336_v9 = vand.u32 4294901760, %v265_v6  ;;  %v343_v10 = vsub.f32 %v261_v3, %v342_v7  ;;  %v389_v11 = vsub.f32 %v262_v2, %v302_v5  ;;  %s1024_s4 = sshll.u32 %s1109_s30, 4  ;;  %s1025_s4 = int_to_ptr.vmem [resolvable:$false] %s1024_s4 }
  0x3f   : > { %p1022_p0 = pnand %p1021_p8, %p1176_p9  ;;  %s1026_s12 = scalar_lea.vmem %s1025_s4, 128 }
  0x40   : > { %301 = vmatprep.subr.mxu0 %v300_v8  ;;  %v337_v12 = vsub.f32 %v265_v6, %v336_v9  ;;  %v383_v13 = vsub.f32 %v268_v4, %v300_v8  ;;  %v344_v14 = vand.u32 4294901760, %v343_v10  ;;  %v390_v15 = vand.u32 4294901760, %v389_v11  ;;  %427 = vmatprep.mubr.f32.mxu1 %v336_v9  ;;  %p1027_p13 = scmp.lt.s32.totalorder %s766_s20, %s1025_s4  ;;  %p1028_p5 = scmp.lt.s32.totalorder %s1026_s12, %s1020_s8 }
  0x41   : > { %303 = vmatpush1.xpose.msra.mxu0 %v302_v5  ;;  %v263_v41 = vld [vmem:[#allocation2] sm:$0xf]  ;;  %p1023_p3 = pneg %p1022_p0 }
  0x42   : > { %v338_v16 = vand.u32 4294901760, %v337_v12  ;;  %v384_v17 = vand.u32 4294901760, %v383_v13  ;;  %v345_v18 = vsub.f32 %v343_v10, %v344_v14  ;;  %v391_v19 = vsub.f32 %v389_v11, %v390_v15  ;;  %466 = vmatprep.subr.mxu0 %v383_v13  ;;  %p1029_p12 = por %p1028_p5, %p1027_p13 }
  0x44   : > { %v339_v20 = vsub.f32 %v337_v12, %v338_v16  ;;  %v385_v21 = vsub.f32 %v383_v13, %v384_v17  ;;  %v346_v22 = vand.u32 4294901760, %v345_v18  ;;  %v392_v23 = vand.u32 4294901760, %v391_v19  ;;  %p1030_p6 = pnand %p1029_p12, %p1023_p3 }
  0x46   : > { %v340_v24 = vand.u32 4294901760, %v339_v20  ;;  %v386_v25 = vand.u32 4294901760, %v385_v21 }
  0x48   : > { %341 = vmatprep.mubr.f32.mxu0 %v340_v24  ;;  %387 = vmatprep.subr.mxu1 %v386_v25 }
  0x49   : > { %347 = vmatmul.mubr.f32.vlgmr.msra.gmra.mxu0 %v346_v22  ;;  %393 = vmatpush1.xpose.msra.mxu1 %v392_v23 }
  0x4a   : > { %469 = vmatpush1.xpose.msra.mxu0 %v389_v11  ;;  %504 = vmatprep.mubr.f32.mxu0 %v337_v12 }
  0x4b   : > { %543 = vmatprep.subr.mxu1 %v300_v8  ;;  %623 = vmatprep.subr.mxu0 %v384_v17 }
  0x4c   : > { %429 = vmatmul.mubr.f32.vlgmr.msra.gmra.mxu1 %v342_v7 }
  0x4d   : > { %507 = vmatmul.mubr.f32.vlgmr.msra.gmra.mxu0 %v343_v10  ;;  %545 = vmatpush1.xpose.msra.mxu1 %v302_v5 }
  0x4e   : > { %627 = vmatpush1.xpose.msra.mxu0 %v390_v15  ;;  %581 = vmatprep.mubr.f32.mxu1 %v338_v16 }
  0x4f   : > { %661 = vmatprep.mubr.f32.mxu0 %v336_v9  ;;  %699 = vmatprep.subr.mxu1 %v300_v8 }
  0x50   : > { %585 = vmatmul.mubr.f32.vlgmr.msra.gmra.mxu1 %v344_v14 }
  0x51   : > { %663 = vmatmul.mubr.f32.vlgmr.msra.gmra.mxu0 %v342_v7  ;;  %701 = vmatpush1.xpose.msra.mxu1 %v302_v5 }
  0x52   : > { %735 = vmatprep.mubr.f32.mxu1 %v336_v9 }
  0x54   : > { %737 = vmatmul.mubr.f32.vlgmr.msra.gmra.mxu1 %v342_v7 }
 0x109   : > { %v348_v27 = vpop.f32.mrf.mxu0 }
 0x10b   : > { %v350_v28 = vpop.f32.mrf.mxu0 }
 0x10c   : > { %v430_v29 = vpop.f32.mrf.mxu1 }
 0x10d   : > { %v431_v30 = vadd.f32 %v430_v29, %v348_v27  ;;  %v508_v31 = vpop.f32.mrf.mxu0 }
 0x10e   : > { %v432_v32 = vpop.f32.mrf.mxu1 }
 0x10f   : > { %v509_v33 = vadd.f32 %v508_v31, %v431_v30  ;;  %v510_v34 = vpop.f32.mrf.mxu0 }
 0x110   : > { %v586_v35 = vpop.f32.mrf.mxu1 }
 0x111   : > { %v587_v36 = vadd.f32 %v586_v35, %v509_v33  ;;  %v664_v37 = vpop.f32.mrf.mxu0 }
 0x112   : > { %v588_v38 = vpop.f32.mrf.mxu1 }
 0x113   : > { %v665_v39 = vadd.f32 %v664_v37, %v587_v36  ;;  %v666_v40 = vpop.f32.mrf.mxu0 }
 0x114   : > { %v738_v42 = vpop.f32.mrf.mxu1 }
 0x115   : > { %v739_v43 = vadd.f32 %v738_v42, %v665_v39 }
 0x116   : > { %v740_v44 = vpop.f32.mrf.mxu1 }
 0x117   : > { %v742_v45 = vadd.f32 %v739_v43, %v263_v41 }
 0x119   : > { %744 = vst.msk [vmem:[#allocation2] sm:$0xf] %vm257_vm0, %v742_v45 }
 0x120   : > { %v748_v46 = vld [vmem:[#allocation2] sm:$0xf] }
 0x121   : > { %749 = vst.msk [vmem:[%s244_s19] sm:$0xf] %vm257_vm0, %v748_v46 }
 0x122   : > { %1033 = shalt.err (!%p1030_p6)
}
 0x123   : > { %s1034_s6 = scalar_lea.hbm %s1253_s3, 64  ;;  %s1038_s27 = scalar_lea.hbm %s1298_s2, 128 }
 0x124   : > { %p1035_p7 = scmp.ne.s32.totalorder %s1253_s3, %s1034_s6  ;;  %p1039_p4 = scmp.lt.s32.totalorder %s1253_s3, %s1298_s2 }
 0x125   : > { %p1040_p10 = scmp.lt.s32.totalorder %s1038_s27, %s1034_s6 }
 0x126   : > { %p1036_p1 = pnand %p1035_p7, %p1176_p9 }
 0x127   : > { %p1041_p8 = por %p1040_p10, %p1039_p4 }
 0x128   : > { %p1037_p2 = pneg %p1036_p1 }
 0x12a   : > { %p1042_p0 = pnand %p1041_p8, %p1037_p2 }
 0x12c   : > { %1045 = shalt.err (!%p1042_p0)
}
 0x12d   : > { %900 = dma.vmem_to_hbm [thread:$0]  (%p1176_p9), %s766_s20, 64, %s1253_s3, %s751_s7  }
 0x12e PF: > { %s777_s16 = sand.u32 1, %s1084_s9   ;;  %p1305_p3 = scmp.ge.s32.totalorder %s1104_s14, 2 }
 0x12f   : > { %s778_s21 = scalar_lea.sflag [#allocation5], %s777_s16 }
 0x130   : > { %p910_p13 = pnand %p1305_p3, %p1183_p11 }
 0x132   : > { %p911_p5 = pneg %p910_p13 }
 0x134   : > { %1079 = dma.done.wait (%p911_p5), %s778_s21, 64  }
 0x135   : > { %1081 = vsyncadd (%p911_p5), %s778_s21, 4294967232  ;;  %s21_s14 = sadd.s32 1, %s1104_s14   ;;  %s1306_s9 = smov %s1088_s10 }
 0x136   : > { %p18_p12 = scmp.ge.s32.totalorder %s21_s14, 4   ;;  %s1307_s10 = smov %s1092_s11 }
 0x137   : > { %s1308_s11 = smov %s1181_s23  ;;  %s1309_s12 = smov %s1100_s13 }
 0x138   : > { %s1310_s13 = smov %s1312_s17  ;;  %20 = sbr.rel (!%p18_p12) target bundleno = 8 (0x8), region = 94 }
 0x13d   :  { %783 = vsyncpa [#allocation4], 1 }
 0x13e   :  { %785 = vsyncpa [#allocation4 + $0x1], 1 }
 0x13f   :  { %786 = vsyncpa [#allocation7], 1 }
 0x140   :  { %788 = vsyncpa [#allocation7 + $0x1], 1 }
 0x141   :  { %789 = vsyncpa [#allocation5], 1 }
 0x142   :  { %791 = vsyncpa [#allocation5 + $0x1], 1 }

</bundles_post_ra>
